<compile_context>
chip_gen: v6e
topology: v6e:2x2x1
jax: 0.10.0
libtpu: 0.0.40
codegen_flags: <defaults>
</compile_context>

<pallas_src>
import functools

import jax
import jax.numpy as jnp
import numpy as np
from jax import lax
from jax.experimental import pallas as pl
from jax.experimental.pallas import tpu as pltpu


def _round_up(x, m):
    return ((x + m - 1) // m) * m


def _pick_row_tile(m, candidates=(512, 256, 128)):
    for c in candidates:
        if m % c == 0:
            return c
    return m  # m is always a multiple of 128 in this file


# ----------------------------------------------------------------------------
# Generic parallel matmul + bias:  (M, K) @ (K, N) + b  ->  (M, N)
# Weight axis is the OUTER grid dim so each (K, tn) weight tile is DMA'd once.
# ----------------------------------------------------------------------------
def _matmul_bias_kernel(x_ref, w_ref, b_ref, o_ref):
    o_ref[...] = (jnp.dot(x_ref[...], w_ref[...],
                          preferred_element_type=jnp.float32)
                  + b_ref[...]).astype(o_ref.dtype)


def _matmul_bias(x, w, b, out_dtype):
    M, K = x.shape
    _, N = w.shape
    tm = _pick_row_tile(M)
    tn = 256 if N % 256 == 0 else 128

    need = 2 * (tm * K * x.dtype.itemsize          # row tiles (double buffered)
                + K * tn * w.dtype.itemsize        # weight tiles
                + tn * b.dtype.itemsize            # bias tiles
                + tm * tn * np.dtype(out_dtype).itemsize)
    vmem_limit = int(min(64 << 20, max(need + (4 << 20), 32 << 20)))

    return pl.pallas_call(
        _matmul_bias_kernel,
        out_shape=jax.ShapeDtypeStruct((M, N), out_dtype),
        grid_spec=pltpu.PrefetchScalarGridSpec(
            num_scalar_prefetch=0,
            grid=(N // tn, M // tm),               # weight axis outer, rows inner
            in_specs=[
                pl.BlockSpec((tm, K), lambda j, i: (i, 0)),   # rows (re-streamed)
                pl.BlockSpec((K, tn), lambda j, i: (0, j)),   # weight (read once)
                pl.BlockSpec((1, tn), lambda j, i: (0, j)),   # bias
            ],
            out_specs=pl.BlockSpec((tm, tn), lambda j, i: (i, j)),
        ),
        compiler_params=pltpu.CompilerParams(
            dimension_semantics=("parallel", "parallel"),
            vmem_limit_bytes=vmem_limit,
        ),
    )(x, w, b)


# ----------------------------------------------------------------------------
# Recurrent LSTM kernel: per grid step, TT timesteps of one batch block.
# Only the hidden-to-hidden matmul is on the serial path.
# ----------------------------------------------------------------------------
def _lstm_chunk_kernel(pre_ref, whh_ref, hout_ref, h_sc, c_sc, *, hp, tt):
    # Zero-init the carried state at the start of every batch block (matches the
    # PyTorch i == 0 initialization).
    @pl.when(pl.program_id(1) == 0)
    def _():
        h_sc[...] = jnp.zeros_like(h_sc)
        c_sc[...] = jnp.zeros_like(c_sc)

    def step(s, carry):
        # gates = (x_t @ W_ih + b)   [precomputed, f32]  +  h_{t-1} @ W_hh  [MXU]
        gates = pre_ref[s] + jnp.dot(h_sc[...], whh_ref[...],
                                     preferred_element_type=jnp.float32)

        # PyTorch LSTMCell gate order: i, f, g, o.  Each gate block is padded to
        # hp (multiple of 128) so every slice is lane-aligned.
        i_g = jax.nn.sigmoid(gates[:, 0 * hp:1 * hp])
        f_g = jax.nn.sigmoid(gates[:, 1 * hp:2 * hp])
        g_g = jnp.tanh(gates[:, 2 * hp:3 * hp])
        o_g = jax.nn.sigmoid(gates[:, 3 * hp:4 * hp])

        c_new = f_g * c_sc[...] + i_g * g_g
        h_new = (o_g * jnp.tanh(c_new)).astype(jnp.bfloat16)

        c_sc[...] = c_new          # f32 carry
        h_sc[...] = h_new          # bf16 carry (MXU input dtype)
        hout_ref[s] = h_new
        return carry

    lax.fori_loop(0, tt, step, 0, unroll=True)


def rnn_decoder_forward(x, caption, params, *, tt=16):
    """Pallas implementation of RNN_Decoder.forward.

    x:       (B, embed_size) float32  (image feature)
    caption: (B, T) int32
    returns: (B, T, vocab_size) float32
    """
    embed_w = params["embed"]          # (V, E)
    w_ih = params["w_ih"]              # (4H, E)
    w_hh = params["w_hh"]              # (4H, H)
    b_ih = params["b_ih"]              # (4H,)
    b_hh = params["b_hh"]              # (4H,)
    w_fc = params["w_fc"]              # (V, H)
    b_fc = params["b_fc"]              # (V,)

    B, E = x.shape
    T = caption.shape[1]
    H = w_hh.shape[1]
    V = w_fc.shape[0]

    # Padded sizes: lane-/sublane-friendly tiles.
    Bp = _round_up(B, 16)              # bf16 sublane tile
    Ep = _round_up(E, 128)
    Hp = _round_up(H, 128)
    Vp = _round_up(V, 128)
    # Time chunk: clamp to T and keep it a multiple of 8 so Tp*Bp is a multiple
    # of 128 (lane-dense row tiles for the parallel matmuls).
    tt = _round_up(min(tt, T), 8)
    Tp = _round_up(T, tt)

    # Batch-block axis so v7x's two TensorCores can split the recurrence.
    nb = 2 if (Bp >= 32 and Bp % 32 == 0) else 1
    bb = Bp // nb

    # --- glue (bf16): embedding gather + time-major input (step 0 uses x) ---
    cap_tm = jnp.transpose(embed_w.astype(jnp.bfloat16)[caption], (1, 0, 2))   # (T,B,E)
    inp_seq = jnp.concatenate([x.astype(jnp.bfloat16)[None], cap_tm[1:]], axis=0)
    inp_seq = jnp.pad(inp_seq, ((0, Tp - T), (0, Bp - B), (0, Ep - E)))         # (Tp,Bp,Ep)

    # --- gate-block-padded weights: gate k occupies cols [k*Hp, k*Hp + H) ---
    w_ih_p = jnp.zeros((Ep, 4 * Hp), jnp.float32)
    w_hh_p = jnp.zeros((Hp, 4 * Hp), jnp.float32)
    b_p = jnp.zeros((1, 4 * Hp), jnp.float32)
    for k in range(4):
        w_ih_p = w_ih_p.at[:E, k * Hp:k * Hp + H].set(w_ih[k * H:(k + 1) * H, :].T)
        w_hh_p = w_hh_p.at[:H, k * Hp:k * Hp + H].set(w_hh[k * H:(k + 1) * H, :].T)
        b_p = b_p.at[0, k * Hp:k * Hp + H].set(
            b_ih[k * H:(k + 1) * H] + b_hh[k * H:(k + 1) * H])
    w_ih_p = w_ih_p.astype(jnp.bfloat16)
    w_hh_p = w_hh_p.astype(jnp.bfloat16)

    wfc_p = jnp.zeros((Hp, Vp), jnp.float32).at[:H, :V].set(w_fc.T).astype(jnp.bfloat16)
    bfc_p = jnp.zeros((1, Vp), jnp.float32).at[0, :V].set(b_fc)

    M = Tp * Bp                                            # multiple of 128

    # --- hoisted input-to-hidden projection (+ fused bias), all steps at once ---
    preact = _matmul_bias(inp_seq.reshape(M, Ep), w_ih_p, b_p, jnp.float32)
    preact = preact.reshape(Tp, Bp, 4 * Hp)                # f32 pre-activations

    # --- recurrent kernel: only h_{t-1} @ W_hh on the serial path ---
    lstm_vmem = (2 * tt * bb * 4 * Hp * 4        # preact chunks (f32, double buffered)
                 + 2 * Hp * 4 * Hp * 2           # W_hh buffers (bf16)
                 + 2 * tt * bb * Hp * 2          # h output chunks (bf16, double buffered)
                 + bb * Hp * (2 + 4))            # h (bf16) + c (f32) scratch
    lstm_vmem = int(min(64 << 20, max(lstm_vmem + (4 << 20), 32 << 20)))

    lstm_kernel = functools.partial(_lstm_chunk_kernel, hp=Hp, tt=tt)
    h_seq = pl.pallas_call(
        lstm_kernel,
        out_shape=jax.ShapeDtypeStruct((Tp, Bp, Hp), jnp.bfloat16),
        grid_spec=pltpu.PrefetchScalarGridSpec(
            num_scalar_prefetch=0,
            grid=(nb, Tp // tt),
            in_specs=[
                pl.BlockSpec((tt, bb, 4 * Hp), lambda b, t: (t, b, 0)),   # preact chunk
                pl.BlockSpec((Hp, 4 * Hp), lambda b, t: (0, 0)),          # W_hh (invariant)
            ],
            out_specs=pl.BlockSpec((tt, bb, Hp), lambda b, t: (t, b, 0)),
            scratch_shapes=[
                pltpu.VMEM((bb, Hp), jnp.bfloat16),   # h carry (MXU input dtype)
                pltpu.VMEM((bb, Hp), jnp.float32),    # c carry (f32 for accuracy)
            ],
        ),
        compiler_params=pltpu.CompilerParams(
            dimension_semantics=("parallel", "arbitrary"),   # batch || , time serial
            vmem_limit_bytes=lstm_vmem,
        ),
    )(preact, w_hh_p)

    # --- vocab projection: one parallel matmul, W_fc streamed from HBM once ---
    logits = _matmul_bias(h_seq.reshape(M, Hp), wfc_p, bfc_p, jnp.float32)

    out = logits.reshape(Tp, Bp, Vp)[:T, :B, :V]           # drop padding
    return jnp.transpose(out, (1, 0, 2))                   # (B, T, V)


# ----------------------------------------------------------------------------
# Plain-JAX reference mirroring the PyTorch forward exactly (f32 throughout).
# ----------------------------------------------------------------------------
def rnn_decoder_reference(x, caption, params):
    embed_w = params["embed"]
    w_ih, w_hh = params["w_ih"], params["w_hh"]
    b_ih, b_hh = params["b_ih"], params["b_hh"]
    w_fc, b_fc = params["w_fc"], params["b_fc"]

    B, T = caption.shape
    H = w_hh.shape[1]

    cap = jnp.transpose(embed_w[caption], (1, 0, 2))   # (T, B, E)

    def lstm_cell(inp, h, c):
        gates = inp @ w_ih.T + b_ih + h @ w_hh.T + b_hh
        i_g = jax.nn.sigmoid(gates[:, 0 * H:1 * H])
        f_g = jax.nn.sigmoid(gates[:, 1 * H:2 * H])
        g_g = jnp.tanh(gates[:, 2 * H:3 * H])
        o_g = jax.nn.sigmoid(gates[:, 3 * H:4 * H])
        c_new = f_g * c + i_g * g_g
        h_new = o_g * jnp.tanh(c_new)
        return h_new, c_new

    outs = []
    h = jnp.zeros((B, H), jnp.float32)
    c = jnp.zeros((B, H), jnp.float32)
    for i in range(T):
        inp = x if i == 0 else cap[i]
        h, c = lstm_cell(inp, h, c)
        outs.append(h @ w_fc.T + b_fc)
    return jnp.stack(outs, axis=1)   # (B, T, V)


def init_params(key, embed_size, hidden_size, vocab_size):
    ks = jax.random.split(key, 7)
    s = 0.1
    return {
        "embed": s * jax.random.normal(ks[0], (vocab_size, embed_size), jnp.float32),
        "w_ih": s * jax.random.normal(ks[1], (4 * hidden_size, embed_size), jnp.float32),
        "w_hh": s * jax.random.normal(ks[2], (4 * hidden_size, hidden_size), jnp.float32),
        "b_ih": s * jax.random.normal(ks[3], (4 * hidden_size,), jnp.float32),
        "b_hh": s * jax.random.normal(ks[4], (4 * hidden_size,), jnp.float32),
        "w_fc": s * jax.random.normal(ks[5], (vocab_size, hidden_size), jnp.float32),
        "b_fc": s * jax.random.normal(ks[6], (vocab_size,), jnp.float32),
    }


if __name__ == "__main__":
    B, E, H, V, T = 4, 16, 32, 64, 8

    key = jax.random.PRNGKey(0)
    k_par, k_x, k_cap = jax.random.split(key, 3)

    params = init_params(k_par, E, H, V)
    x = jax.random.normal(k_x, (B, E), jnp.float32)          # image feature (batch, embed)
    caption = jax.random.randint(k_cap, (B, T), 0, V, jnp.int32)

    out = rnn_decoder_forward(x, caption, params)
    out = jax.block_until_ready(out)

    ref = rnn_decoder_reference(x, caption, params)
    # bf16 matmul inputs / bf16 h carry (f32 accumulation) -> loose-but-meaningful tolerance.
    np.testing.assert_allclose(np.asarray(out), np.asarray(ref), rtol=2e-2, atol=2e-2)

    assert out.shape == (B, T, V)
    print("KERNEL_OK")
</pallas_src>

<mosaic_0001>
module attributes {stable_mosaic.version = 11 : i64} {
  func.func @_matmul_bias_kernel(%arg0: i32, %arg1: i32, %arg2: memref<128x128xbf16, #tpu.memory_space<vmem>>, %arg3: memref<128x256xbf16, #tpu.memory_space<vmem>>, %arg4: memref<1x256xf32, #tpu.memory_space<vmem>>, %arg5: memref<128x256xf32, #tpu.memory_space<vmem>>) attributes {dimension_semantics = [#tpu.dimension_semantics<parallel>, #tpu.dimension_semantics<parallel>], iteration_bounds = array<i64: 2, 1>, scalar_prefetch = 0 : i64, scratch_operands = 0 : i64, tpu.core_type = #tpu.core_type<tc>, window_params = [{transform_indices = @transform_0, window_bounds = array<i64: 128, 128>}, {transform_indices = @transform_1, window_bounds = array<i64: 128, 256>}, {transform_indices = @transform_2, window_bounds = array<i64: 1, 256>}, {transform_indices = @transform_3, window_bounds = array<i64: 128, 256>}]} {
    %c0 = arith.constant 0 : index
    %c0_0 = arith.constant 0 : index
    %0 = vector.load %arg2[%c0, %c0_0] : memref<128x128xbf16, #tpu.memory_space<vmem>>, vector<128x128xbf16>
    %c0_1 = arith.constant 0 : index
    %c0_2 = arith.constant 0 : index
    %1 = vector.load %arg3[%c0_1, %c0_2] : memref<128x256xbf16, #tpu.memory_space<vmem>>, vector<128x256xbf16>
    %cst = arith.constant dense<0.000000e+00> : vector<128x256xf32>
    %2 = tpu.matmul %0, %1, %cst {dimension_numbers = #tpu.dot_dimension_numbers<[1], [0], [0], [1], [0, 0, 1, 1], [], []>} : vector<128x128xbf16>, vector<128x256xbf16>, vector<128x256xf32> -> vector<128x256xf32>
    %c0_3 = arith.constant 0 : index
    %c0_4 = arith.constant 0 : index
    %3 = vector.load %arg4[%c0_3, %c0_4] : memref<1x256xf32, #tpu.memory_space<vmem>>, vector<1x256xf32>
    %4 = vector.broadcast %3 : vector<1x256xf32> to vector<128x256xf32>
    %5 = arith.addf %2, %4 : vector<128x256xf32>
    %c0_5 = arith.constant 0 : index
    %c0_6 = arith.constant 0 : index
    %6 = vector.load %arg5[%c0_5, %c0_6] : memref<128x256xf32, #tpu.memory_space<vmem>>, vector<128x256xf32>
    tpu.vector_store %arg5[%c0_5, %c0_6], %5 {strides = array<i32>} : memref<128x256xf32, #tpu.memory_space<vmem>>, vector<128x256xf32>,
    return
  }
  func.func @transform_0(%arg0: i32, %arg1: i32) -> (i32, i32) {
    %c0_i32 = arith.constant 0 : i32
    %c0_i32_0 = arith.constant 0 : i32
    return %arg1, %c0_i32 : i32, i32
  }
  func.func @transform_1(%arg0: i32, %arg1: i32) -> (i32, i32) {
    %c0_i32 = arith.constant 0 : i32
    %c0_i32_0 = arith.constant 0 : i32
    return %c0_i32, %arg0 : i32, i32
  }
  func.func @transform_2(%arg0: i32, %arg1: i32) -> (i32, i32) {
    %c0_i32 = arith.constant 0 : i32
    %c0_i32_0 = arith.constant 0 : i32
    return %c0_i32, %arg0 : i32, i32
  }
  func.func @transform_3(%arg0: i32, %arg1: i32) -> (i32, i32) {
    %c0_i32 = arith.constant 0 : i32
    return %arg1, %arg0 : i32, i32
  }
}

</mosaic_0001>

<bundles_post_ra>
// kernel: tpu_custom_call.1
= control target key start
LH: loop header
LB: loop body
LE: loop exit
PB: predicated region body
PF: predicated region fallthrough
CT: control target
= control target key end

     0   :  { %8 = vsyncpa [#allocation3], 0  ;;  %s1401_s0 = inlined_call_operand.hbm [shape: bf16[128,128], index: 0, kind: input, shape index: {}]   ;;  %s1402_s1 = inlined_call_operand.hbm [shape: bf16[128,512], index: 1, kind: input, shape index: {}]   ;;  %s1403_s2 = inlined_call_operand.hbm [shape: f32[1,512], index: 2, kind: input, shape index: {}]   ;;  %s1404_s3 = inlined_call_operand.hbm [shape: f32[128,512], index: 3, kind: output, shape index: {}]  }
   0x1   :  { %9 = vsyncpa [#allocation6], 0 }
   0x2   :  { %11 = vsyncpa [#allocation6 + $0x1], 0 }
   0x3   :  { %12 = vsyncpa [#allocation4], 0 }
   0x4   :  { %14 = vsyncpa [#allocation4 + $0x1], 0  ;;  %s1103_s12 = smov 0   ;;  %s1105_s13 = smov 0  }
   0x5   :  { %s1107_s14 = smov 0   ;;  %s1109_s15 = smov 0  }
   0x6   :  { %s1111_s16 = smov 0   ;;  %s1113_s17 = smov 0  }
   0x7 LB: > { %s32_s18 = sadd.s32 1, %s1064_s16  ;;  %s65_s19 = sadd.s32 1, %s1056_s14  ;;  %s1068_s17 = sphi %s1113_s17, %s20_s17   ;;  %s1064_s16 = sphi %s1111_s16, %s1424_s16   ;;  %s1060_s15 = sphi %s1109_s15, %s1423_s15   ;;  %s1056_s14 = sphi %s1107_s14, %s1422_s14   ;;  %s1052_s13 = sphi %s1105_s13, %s1421_s13   ;;  %s1048_s12 = sphi %s1103_s12, %s1420_s12  }
   0x8   : > { %p34_p0 = scmp.ge.s32.totalorder %s32_s18, 2  ;;  %p72_p1 = scmp.ne.s32.totalorder %s1056_s14, %s1052_s13 }
   0x9   : > { %p73_p2 = scmp.eq.s32.totalorder %s1068_s17, 0  ;;  %p809_p5 = scmp.lt.s32.totalorder %s1068_s17, 2 }
   0xa   : > { %s1426_s18 = smov (%p34_p0, %s32_s18), 0  ;;  %s172_s21 = sand.u32 1, %s1068_s17  }
   0xb   : > { %p74_p4 = por %p73_p2, %p72_p1  ;;  %s62_s20 = ssub.s32 %s1064_s16, %s1426_s18 }
   0xc   : > { %p63_p6 = scmp.eq.s32.totalorder %s62_s20, 0  ;;  %s174_s22 = sand.u32 1, %s1056_s14  }
   0xd   : > { %s764_s23 = sshll.u32 %s1064_s16, 7  ;;  %s724_s25 = sshll.u32 %s174_s22, 7 }
   0xe   : > { %s1151_s24 = scalar_select %p63_p6, %s1056_s14, %s65_s19  }
   0xf   : > { %s182_s28 = scalar_lea.hbm %s1402_s1, %s764_s23  ;;  %p1158_p7 = pnand %p809_p5, %p74_p4 }
  0x10   : > { %s176_s30 = scalar_lea.vmem [#allocation5], %s724_s25  ;;  %s1162_s5 = scalar_lea.sflag [#allocation6], %s172_s21 }
  0x11   : > { %s183_s4 = sshll.u32 %s176_s30, 4  ;;  %p1406_p8 = pneg %p1158_p7  ;;  %s184_s4 = int_to_ptr.vmem [resolvable:$true] %s183_s4 }
  0x12   : > { %s915_s6 = scalar_lea.vmem %s184_s4, 2048  ;;  %s1070_s7 = smov [#allocation5]  }
  0x13   : > { %p916_p9 = scmp.ne.s32.totalorder %s184_s4, %s915_s6  ;;  %s920_s8 = sshll.u32 %s1070_s7, 4  ;;  %s921_s8 = int_to_ptr.vmem [resolvable:$false] %s920_s8 }
  0x14   : > { %s922_s9 = scalar_lea.vmem %s921_s8, 4096  ;;  %p923_p12 = scmp.lt.s32.totalorder %s184_s4, %s921_s8 }
  0x15   : > { %p918_p10 = pnand %p916_p9, %p1406_p8  ;;  %p924_p13 = scmp.lt.s32.totalorder %s922_s9, %s915_s6 }
  0x17   : > { %p919_p11 = pneg %p918_p10  ;;  %p925_p0 = por %p924_p13, %p923_p12 }
  0x19   : > { %p926_p2 = pnand %p925_p0, %p919_p11 }
  0x1b   : > { %929 = shalt.err (!%p926_p2)
}
  0x1c   : > { %s1071_s10 = smov 256   ;;  %s1072_s11 = smov 128  }
  0x1d   : > { %s1073_s19 = smov 8   ;;  %s1173_s20 = sadd.s32 4294967295, %s1068_s17  }
  0x1e   : > { %800 = dma.hbm_to_vmem [thread:$0]  (!%p1158_p7), %s182_s28, 2048, %s184_s4, %s1162_s5, %s1071_s10, %s1072_s11, %s1073_s19  }
  0x1f   : > { %s720_s21 = sadd.s32 4294967294, %s1068_s17   ;;  %p78_p4 = scmp.ne.s32.totalorder %s1052_s13, %s1048_s12 }
  0x20   : > { %p1405_p5 = scmp.eq.s32.totalorder %s1173_s20, 0  ;;  %p130_p6 = scmp.eq.s32.totalorder %s1173_s20, 1 }
  0x21   : > { %p136_p9 = scmp.eq.s32.totalorder %s720_s21, 1  ;;  %p721_p11 = scmp.ge.s32.totalorder %s1068_s17, 1 }
  0x22   : > { %p1182_p10 = por %p1405_p5, %p78_p4  ;;  %p1190_p12 = por %p130_p6, %p72_p1 }
  0x23   : > { %p1194_p13 = por %p136_p9, %p78_p4  ;;  %p143_p0 = scmp.lt.s32.totalorder %s1068_s17, 3 }
  0x24   : > { %s1410_s25 = scalar_select %p1190_p12, 1, 0 }
  0x25   : > { %s1411_s26 = scalar_select %p1194_p13, 1, 0 }
  0x26   : > { %p1199_p2 = pnand %p721_p11, %p143_p0  ;;  %s1074_s28 = smov [#allocation2]  }
  0x27   : > { %s158_s30 = sshll.u32 %s1074_s28, 4  ;;  %s727_s4 = sshll.u32 %s174_s22, 1  ;;  %s159_s30 = int_to_ptr.vmem [resolvable:$true] %s158_s30 }
  0x28   : > { %p793_p3 = pneg %p1199_p2  ;;  %s765_s6 = sshll.u32 %s1064_s16, 5 }
  0x29   : > { %s1217_s10 = scalar_lea.hbm %s1403_s2, %s765_s6  ;;  %s197_s11 = scalar_lea.vmem [#allocation7], %s727_s4 }
  0x2a   : > { %p1210_p1 = pnand %p793_p3, %p1405_p5  ;;  %s205_s19 = sshll.u32 %s197_s11, 4  ;;  %s206_s19 = int_to_ptr.vmem [resolvable:$true] %s205_s19 }
  0x2b   : > { %s941_s21 = scalar_lea.vmem %s159_s30, 1024  ;;  %p949_p0 = scmp.lt.s32.totalorder %s159_s30, %s159_s30 }
  0x2c   : > { %p932_p4 = pneg %p1210_p1  ;;  %p942_p6 = scmp.ne.s32.totalorder %s159_s30, %s941_s21 }
  0x2d   : > { %p950_p3 = scmp.lt.s32.totalorder %s941_s21, %s941_s21 }
  0x2e   : > { %p944_p9 = pnand %p942_p6, %p932_p4 }
  0x2f   : > { %p951_p5 = por %p950_p3, %p949_p0 }
  0x30   : > { %p945_p11 = pneg %p944_p9 }
  0x32   : > { %p952_p8 = pnand %p951_p5, %p945_p11 }
  0x34   : > { %955 = shalt.err (!%p952_p8)
}
  0x35   : > { %s1075_s22 = smov 64   ;;  %s1076_s28 = smov 4  }
  0x36   : > { %796 = dma.hbm_to_vmem [thread:$0]  (!%p1210_p1), %s1401_s0, 1024, %s159_s30, [#allocation3], %s1075_s22, %s1075_s22, %s1076_s28  }
  0x37   : > { %s969_s8 = scalar_lea.vmem %s206_s19, 32  ;;  %p1414_p12 = pneg %p1158_p7 }
  0x38   : > { %p970_p13 = scmp.ne.s32.totalorder %s206_s19, %s969_s8  ;;  %s1077_s9 = smov [#allocation7]  }
  0x39   : > { %s974_s11 = sshll.u32 %s1077_s9, 4  ;;  %s975_s11 = int_to_ptr.vmem [resolvable:$false] %s974_s11 }
  0x3a   : > { %p972_p4 = pnand %p970_p13, %p1414_p12  ;;  %s976_s21 = scalar_lea.vmem %s975_s11, 64 }
  0x3b   : > { %p977_p8 = scmp.lt.s32.totalorder %s206_s19, %s975_s11  ;;  %p978_p5 = scmp.lt.s32.totalorder %s976_s21, %s969_s8 }
  0x3c   : > { %p973_p6 = pneg %p972_p4 }
  0x3d   : > { %p979_p9 = por %p978_p5, %p977_p8 }
  0x3f   : > { %p980_p11 = pnand %p979_p9, %p973_p6 }
  0x41   : > { %983 = shalt.err (!%p980_p11)
}
  0x42   : > { %803 = dma.hbm_to_vmem [thread:$0]  (!%p1158_p7), %s1217_s10, 32, %s206_s19, %s1162_s5  }
  0x43   : > { %214 = sbr.rel (%p1199_p2) target bundleno = 351 (0x15f), region = 32  ;;  %p1415_p12 = scmp.eq.s32.totalorder (!%p1199_p2), %s1173_s20, 0 }
  0x48   : > { %1035 = dma.done.wait (%p1415_p12), [#allocation3], 1024   ;;  %p1416_p13 = pmov %p1415_p12 }
  0x49   : > { %s220_s30 = sand.u32 1, %s1173_s20   ;;  %s1241_s7 = sand.u32 1, %s1052_s13  }
  0x4a   : > { %1037 = vsyncadd (%p1416_p13), [#allocation3], 4294966272  ;;  %s732_s29 = sshll.u32 %s1241_s7, 7  ;;  %s221_s22 = scalar_lea.sflag [#allocation6], %s220_s30 }
  0x4b   : > { %s1244_s28 = scalar_lea.vmem [#allocation5], %s732_s29 }
  0x4c   : > { %1039 = dma.done.wait (%p1182_p10), %s221_s22, 2080  }
  0x4d   : > { %1041 = vsyncadd (%p1182_p10), %s221_s22, 4294965216  ;;  %v1078_v0 = vmov 0   ;;  %v870_v1 = vld [vmem:[%s1244_s28 + $0x74] ss:$8 sps:$4 sm:$0xff]   ;;  %v872_v2 = vld [vmem:[%s1244_s28 + $0x70] ss:$8 sps:$4 sm:$0xff]   ;;  %v301_v25 = vlaneseq }
  0x4e   : > { %471 = vmatprep.mubr.bf16.mxu0 %v1078_v0  ;;  %511 = vmatprep.mubr.bf16.mxu1 %v1078_v0  ;;  %v873_v3 = vld [vmem:[%s1244_s28 + $0x64] ss:$8 sps:$4 sm:$0xff]   ;;  %v875_v4 = vld [vmem:[%s1244_s28 + $0x60] ss:$8 sps:$4 sm:$0xff]   ;;  %v876_v5 = vld [vmem:[%s1244_s28 + $0x54] ss:$8 sps:$4 sm:$0xff]  }
  0x4f   : > { %439 = vmatprep.subr.bf16.mxu0 %v870_v1  ;;  %767 = vmatprep.subr.bf16.mxu1 %v870_v1  ;;  %v878_v6 = vld [vmem:[%s1244_s28 + $0x50] ss:$8 sps:$4 sm:$0xff]   ;;  %v879_v7 = vld [vmem:[%s1244_s28 + $0x44] ss:$8 sps:$4 sm:$0xff]   ;;  %v881_v8 = vld [vmem:[%s1244_s28 + $0x40] ss:$8 sps:$4 sm:$0xff]  }
  0x50   : > { %440 = vmatpush1.bf16.msra.mxu0 %v872_v2  ;;  %775 = vmatpush1.bf16.msra.mxu1 %v872_v2  ;;  %v882_v9 = vld [vmem:[%s1244_s28 + $0x34] ss:$8 sps:$4 sm:$0xff]   ;;  %v884_v10 = vld [vmem:[%s1244_s28 + $0x30] ss:$8 sps:$4 sm:$0xff]   ;;  %v885_v11 = vld [vmem:[%s1244_s28 + $0x24] ss:$8 sps:$4 sm:$0xff]  }
  0x51   : > { %441 = vmatprep.subr.bf16.mxu0 %v873_v3  ;;  %768 = vmatprep.subr.bf16.mxu1 %v873_v3  ;;  %v887_v12 = vld [vmem:[%s1244_s28 + $0x20] ss:$8 sps:$4 sm:$0xff]   ;;  %v888_v13 = vld [vmem:[%s1244_s28 + $0x14] ss:$8 sps:$4 sm:$0xff]   ;;  %v890_v14 = vld [vmem:[%s1244_s28 + $0x10] ss:$8 sps:$4 sm:$0xff]  }
  0x52   : > { %v891_v15 = vld [vmem:[%s1244_s28 + $0x4] ss:$8 sps:$4 sm:$0xff]   ;;  %v893_v16 = vld [vmem:[%s1244_s28] ss:$8 sps:$4 sm:$0xff]   ;;  %v898_v21 = vld [vmem:[#allocation2 + $0x10] sm:$0xff]   ;;  %s733_s5 = sshll.u32 %s1241_s7, 1 }
  0x53   : > { %v894_v17 = vld [vmem:[#allocation2] sm:$0xff]   ;;  %v896_v19 = vld [vmem:[#allocation2 + $0x8] sm:$0xff]   ;;  %v899_v22 = vld [vmem:[#allocation2 + $0x30] sm:$0xff]   ;;  %v302_v26 = vshrl.u32 %v301_v25, 7  ;;  %s233_s20 = scalar_lea.vmem [#allocation7], %s733_s5  ;;  %s734_s23 = sshll.u32 %s1241_s7, 8 }
  0x54   : > { %442 = vmatpush1.bf16.msra.mxu0 %v875_v4  ;;  %776 = vmatpush1.bf16.msra.mxu1 %v875_v4  ;;  %v895_v18 = vld [vmem:[#allocation2 + $0x20] sm:$0xff]   ;;  %v897_v20 = vld [vmem:[#allocation2 + $0x28] sm:$0xff]   ;;  %v900_v23 = vld [vmem:[#allocation2 + $0x18] sm:$0xff]   ;;  %s1282_s27 = scalar_lea.vmem [#allocation8], %s734_s23  ;;  %s766_s10 = sshll.u32 %s1060_s15, 8 }
  0x55   : > { %443 = vmatprep.subr.bf16.mxu0 %v876_v5  ;;  %769 = vmatprep.subr.bf16.mxu1 %v876_v5  ;;  %v901_v24 = vld [vmem:[#allocation2 + $0x38] sm:$0xff]   ;;  %v303_v27 = vsub.s32 0, %v302_v26  ;;  %v299_v28 = vld [vmem:[%s233_s20] sm:$0x3]  ;;  %v307_v29 = vsub.s32 1, %v302_v26  ;;  %s601_s19 = sshll.u32 %s1282_s27, 4  ;;  %s1345_s4 = scalar_lea.hbm %s1404_s3, %s766_s10  ;;  %s1347_s19 = int_to_ptr.vmem [resolvable:$true] %s601_s19 }
  0x56   : > { %s585_s8 = scalar_lea.sflag [#allocation4], %s1241_s7  ;;  %s984_s9 = scalar_lea.vmem %s1347_s19, 4096 }
  0x57   : > { %v1276_v30 = vrot.slane %v299_v28, %v303_v27  ;;  %v1278_v31 = vrot.slane %v299_v28, %v307_v29  ;;  %p985_p7 = scmp.ne.s32.totalorder %s1347_s19, %s984_s9  ;;  %p1417_p10 = scmp.ne.s32.totalorder %s1410_s25, 0 }
  0x58   : > { %444 = vmatpush1.bf16.msra.mxu0 %v878_v6  ;;  %777 = vmatpush1.bf16.msra.mxu1 %v878_v6  ;;  %s1079_s11 = smov [#allocation8]  }
  0x59   : > { %445 = vmatprep.subr.bf16.mxu0 %v879_v7  ;;  %770 = vmatprep.subr.bf16.mxu1 %v879_v7  ;;  %p986_p2 = pnand %p985_p7, %p1417_p10  ;;  %s988_s21 = sshll.u32 %s1079_s11, 4  ;;  %s989_s21 = int_to_ptr.vmem [resolvable:$false] %s988_s21 }
  0x5a   : > { %s990_s30 = scalar_lea.vmem %s989_s21, 8192  ;;  %p991_p0 = scmp.lt.s32.totalorder %s1347_s19, %s989_s21 }
  0x5b   : > { %p987_p1 = pneg %p986_p2  ;;  %p992_p3 = scmp.lt.s32.totalorder %s990_s30, %s984_s9 }
  0x5c   : > { %446 = vmatpush1.bf16.msra.mxu0 %v881_v8  ;;  %778 = vmatpush1.bf16.msra.mxu1 %v881_v8 }
  0x5d   : > { %447 = vmatprep.subr.bf16.mxu0 %v882_v9  ;;  %771 = vmatprep.subr.bf16.mxu1 %v882_v9  ;;  %p993_p4 = por %p992_p3, %p991_p0 }
  0x5f   : > { %p994_p6 = pnand %p993_p4, %p987_p1 }
  0x60   : > { %448 = vmatpush1.bf16.msra.mxu0 %v884_v10  ;;  %779 = vmatpush1.bf16.msra.mxu1 %v884_v10 }
  0x61   : > { %449 = vmatprep.subr.bf16.mxu0 %v885_v11  ;;  %772 = vmatprep.subr.bf16.mxu1 %v885_v11 }
  0x64   : > { %450 = vmatpush1.bf16.msra.mxu0 %v887_v12  ;;  %780 = vmatpush1.bf16.msra.mxu1 %v887_v12 }
  0x65   : > { %451 = vmatprep.subr.bf16.mxu0 %v888_v13  ;;  %773 = vmatprep.subr.bf16.mxu1 %v888_v13 }
  0x68   : > { %452 = vmatpush1.bf16.msra.mxu0 %v890_v14  ;;  %781 = vmatpush1.bf16.msra.mxu1 %v890_v14 }
  0x69   : > { %453 = vmatprep.subr.bf16.mxu0 %v891_v15  ;;  %774 = vmatprep.subr.bf16.mxu1 %v891_v15 }
  0x6c   : > { %454 = vmatpush1.bf16.msra.mxu0 %v893_v16  ;;  %782 = vmatpush1.bf16.msra.mxu1 %v893_v16 }
  0x6f   : > { %472 = vmatmul.mubr.bf16.vlgmr.msra.gmra.mxu0 %v894_v17  ;;  %512 = vmatmul.mubr.bf16.vlgmr.msra.gmra.mxu1 %v895_v18 }
  0x70   : > { %481 = vmatprep.mubr.bf16.mxu0 %v1078_v0  ;;  %521 = vmatprep.mubr.bf16.mxu1 %v1078_v0 }
  0x77   : > { %482 = vmatmul.mubr.bf16.gmra.mxu0 %v896_v19  ;;  %522 = vmatmul.mubr.bf16.gmra.mxu1 %v897_v20 }
  0x78   : > { %491 = vmatprep.mubr.bf16.mxu0 %v1078_v0  ;;  %531 = vmatprep.mubr.bf16.mxu1 %v1078_v0 }
  0x7f   : > { %492 = vmatmul.mubr.bf16.gmra.mxu0 %v898_v21  ;;  %532 = vmatmul.mubr.bf16.gmra.mxu1 %v899_v22 }
  0x80   : > { %501 = vmatprep.mubr.bf16.mxu0 %v1078_v0  ;;  %541 = vmatprep.mubr.bf16.mxu1 %v1078_v0 }
  0x87   : > { %502 = vmatmul.mubr.bf16.gmra.mxu0 %v900_v23  ;;  %542 = vmatmul.mubr.bf16.gmra.mxu1 %v901_v24 }
 0x12f   : > { %v473_v32 = vpop.f32.mrf.mxu0  ;;  %v513_v33 = vpop.f32.mrf.mxu1 }
 0x130   : > { %v474_v34 = vadd.f32 %v473_v32, %v1276_v30  ;;  %v514_v35 = vadd.f32 %v513_v33, %v1276_v30 }
 0x131   : > { %v475_v36 = vpop.f32.mrf.mxu0  ;;  %v515_v37 = vpop.f32.mrf.mxu1 }
 0x132   : > { %552 = vst [vmem:[%s1282_s27] sm:$0xff] %v474_v34  ;;  %568 = vst [vmem:[%s1282_s27 + $0x80] sm:$0xff] %v514_v35  ;;  %v476_v38 = vadd.f32 %v475_v36, %v1278_v31  ;;  %v516_v39 = vadd.f32 %v515_v37, %v1278_v31 }
 0x133   : > { %v477_v40 = vpop.f32.mrf.mxu0  ;;  %v517_v41 = vpop.f32.mrf.mxu1 }
 0x134   : > { %553 = vst [vmem:[%s1282_s27 + $0x8] sm:$0xff] %v476_v38  ;;  %569 = vst [vmem:[%s1282_s27 + $0x88] sm:$0xff] %v516_v39  ;;  %v478_v42 = vadd.f32 %v477_v40, %v1276_v30  ;;  %v518_v43 = vadd.f32 %v517_v41, %v1276_v30 }
 0x135   : > { %v479_v44 = vpop.f32.mrf.mxu0  ;;  %v519_v45 = vpop.f32.mrf.mxu1 }
 0x136   : > { %554 = vst [vmem:[%s1282_s27 + $0x10] sm:$0xff] %v478_v42  ;;  %570 = vst [vmem:[%s1282_s27 + $0x90] sm:$0xff] %v518_v43  ;;  %v480_v46 = vadd.f32 %v479_v44, %v1278_v31  ;;  %v520_v47 = vadd.f32 %v519_v45, %v1278_v31 }
 0x137   : > { %v483_v48 = vpop.f32.mrf.mxu0  ;;  %v523_v49 = vpop.f32.mrf.mxu1 }
 0x138   : > { %555 = vst [vmem:[%s1282_s27 + $0x18] sm:$0xff] %v480_v46  ;;  %571 = vst [vmem:[%s1282_s27 + $0x98] sm:$0xff] %v520_v47  ;;  %v484_v50 = vadd.f32 %v483_v48, %v1276_v30  ;;  %v524_v51 = vadd.f32 %v523_v49, %v1276_v30 }
 0x139   : > { %v485_v52 = vpop.f32.mrf.mxu0  ;;  %v525_v53 = vpop.f32.mrf.mxu1 }
 0x13a   : > { %556 = vst [vmem:[%s1282_s27 + $0x20] sm:$0xff] %v484_v50  ;;  %572 = vst [vmem:[%s1282_s27 + $0xa0] sm:$0xff] %v524_v51  ;;  %v486_v54 = vadd.f32 %v485_v52, %v1278_v31  ;;  %v526_v55 = vadd.f32 %v525_v53, %v1278_v31 }
 0x13b   : > { %v487_v56 = vpop.f32.mrf.mxu0  ;;  %v527_v57 = vpop.f32.mrf.mxu1 }
 0x13c   : > { %557 = vst [vmem:[%s1282_s27 + $0x28] sm:$0xff] %v486_v54  ;;  %573 = vst [vmem:[%s1282_s27 + $0xa8] sm:$0xff] %v526_v55  ;;  %v488_v58 = vadd.f32 %v487_v56, %v1276_v30  ;;  %v528_v59 = vadd.f32 %v527_v57, %v1276_v30 }
 0x13d   : > { %v489_v60 = vpop.f32.mrf.mxu0  ;;  %v529_v61 = vpop.f32.mrf.mxu1 }
 0x13e   : > { %558 = vst [vmem:[%s1282_s27 + $0x30] sm:$0xff] %v488_v58  ;;  %574 = vst [vmem:[%s1282_s27 + $0xb0] sm:$0xff] %v528_v59  ;;  %v490_v62 = vadd.f32 %v489_v60, %v1278_v31  ;;  %v530_v63 = vadd.f32 %v529_v61, %v1278_v31 }
 0x13f   : > { %v493_v0 = vpop.f32.mrf.mxu0  ;;  %v533_v1 = vpop.f32.mrf.mxu1 }
 0x140   : > { %559 = vst [vmem:[%s1282_s27 + $0x38] sm:$0xff] %v490_v62  ;;  %575 = vst [vmem:[%s1282_s27 + $0xb8] sm:$0xff] %v530_v63  ;;  %v494_v2 = vadd.f32 %v493_v0, %v1276_v30  ;;  %v534_v3 = vadd.f32 %v533_v1, %v1276_v30 }
 0x141   : > { %v495_v4 = vpop.f32.mrf.mxu0  ;;  %v535_v5 = vpop.f32.mrf.mxu1 }
 0x142   : > { %560 = vst [vmem:[%s1282_s27 + $0x40] sm:$0xff] %v494_v2  ;;  %576 = vst [vmem:[%s1282_s27 + $0xc0] sm:$0xff] %v534_v3  ;;  %v496_v6 = vadd.f32 %v495_v4, %v1278_v31  ;;  %v536_v7 = vadd.f32 %v535_v5, %v1278_v31 }
 0x143   : > { %v497_v8 = vpop.f32.mrf.mxu0  ;;  %v537_v9 = vpop.f32.mrf.mxu1 }
 0x144   : > { %561 = vst [vmem:[%s1282_s27 + $0x48] sm:$0xff] %v496_v6  ;;  %577 = vst [vmem:[%s1282_s27 + $0xc8] sm:$0xff] %v536_v7  ;;  %v498_v10 = vadd.f32 %v497_v8, %v1276_v30  ;;  %v538_v11 = vadd.f32 %v537_v9, %v1276_v30 }
 0x145   : > { %v499_v12 = vpop.f32.mrf.mxu0  ;;  %v539_v13 = vpop.f32.mrf.mxu1 }
 0x146   : > { %562 = vst [vmem:[%s1282_s27 + $0x50] sm:$0xff] %v498_v10  ;;  %578 = vst [vmem:[%s1282_s27 + $0xd0] sm:$0xff] %v538_v11  ;;  %v500_v14 = vadd.f32 %v499_v12, %v1278_v31  ;;  %v540_v15 = vadd.f32 %v539_v13, %v1278_v31 }
 0x147   : > { %v503_v16 = vpop.f32.mrf.mxu0  ;;  %v543_v17 = vpop.f32.mrf.mxu1 }
 0x148   : > { %563 = vst [vmem:[%s1282_s27 + $0x58] sm:$0xff] %v500_v14  ;;  %579 = vst [vmem:[%s1282_s27 + $0xd8] sm:$0xff] %v540_v15  ;;  %v504_v18 = vadd.f32 %v503_v16, %v1276_v30  ;;  %v544_v19 = vadd.f32 %v543_v17, %v1276_v30 }
 0x149   : > { %v505_v20 = vpop.f32.mrf.mxu0  ;;  %v545_v21 = vpop.f32.mrf.mxu1 }
 0x14a   : > { %564 = vst [vmem:[%s1282_s27 + $0x60] sm:$0xff] %v504_v18  ;;  %580 = vst [vmem:[%s1282_s27 + $0xe0] sm:$0xff] %v544_v19  ;;  %v506_v22 = vadd.f32 %v505_v20, %v1278_v31  ;;  %v546_v23 = vadd.f32 %v545_v21, %v1278_v31 }
 0x14b   : > { %v507_v24 = vpop.f32.mrf.mxu0  ;;  %v547_v25 = vpop.f32.mrf.mxu1 }
 0x14c   : > { %565 = vst [vmem:[%s1282_s27 + $0x68] sm:$0xff] %v506_v22  ;;  %581 = vst [vmem:[%s1282_s27 + $0xe8] sm:$0xff] %v546_v23  ;;  %v508_v26 = vadd.f32 %v507_v24, %v1276_v30  ;;  %v548_v27 = vadd.f32 %v547_v25, %v1276_v30 }
 0x14d   : > { %v509_v28 = vpop.f32.mrf.mxu0  ;;  %v549_v29 = vpop.f32.mrf.mxu1 }
 0x14e   : > { %566 = vst [vmem:[%s1282_s27 + $0x70] sm:$0xff] %v508_v26  ;;  %582 = vst [vmem:[%s1282_s27 + $0xf0] sm:$0xff] %v548_v27  ;;  %v510_v32 = vadd.f32 %v509_v28, %v1278_v31  ;;  %v550_v33 = vadd.f32 %v549_v29, %v1278_v31 }
 0x150   : > { %567 = vst [vmem:[%s1282_s27 + $0x78] sm:$0xff] %v510_v32  ;;  %583 = vst [vmem:[%s1282_s27 + $0xf8] sm:$0xff] %v550_v33 }
 0x151   : > { %997 = shalt.err (!%p994_p6)
}
 0x152   : > { %s998_s29 = scalar_lea.hbm %s1345_s4, 4096  ;;  %s1002_s5 = scalar_lea.hbm %s1404_s3, 8192 }
 0x153   : > { %p999_p8 = scmp.ne.s32.totalorder %s1345_s4, %s998_s29  ;;  %p1003_p11 = scmp.lt.s32.totalorder %s1345_s4, %s1404_s3 }
 0x154   : > { %p1004_p12 = scmp.lt.s32.totalorder %s1002_s5, %s998_s29 }
 0x155   : > { %p1000_p5 = pnand %p999_p8, %p1417_p10 }
 0x156   : > { %p1005_p13 = por %p1004_p12, %p1003_p11 }
 0x157   : > { %p1001_p9 = pneg %p1000_p5 }
 0x159   : > { %p1006_p7 = pnand %p1005_p13, %p1001_p9 }
 0x15b   : > { %1009 = shalt.err (!%p1006_p7)
}
 0x15c   : > { %s1080_s27 = smov 256   ;;  %s1081_s10 = smov 512  }
 0x15d   : > { %s1082_s15 = smov 16  }
 0x15e   : > { %791 = dma.vmem_to_hbm [thread:$0]  (%p1417_p10), %s1347_s19, 4096, %s1345_s4, %s585_s8, %s1080_s27, %s1081_s10, %s1082_s15  }
 0x15f PF: > { %s616_s6 = sand.u32 1, %s1048_s12   ;;  %p1418_p2 = scmp.ne.s32.totalorder %s1411_s26, 0 }
 0x160   : > { %p1419_p1 = scmp.ge.s32.totalorder %s1068_s17, 2  ;;  %s617_s9 = scalar_lea.sflag [#allocation4], %s616_s6 }
 0x162   : > { %p805_p0 = pnand %p1419_p1, %p1418_p2 }
 0x164   : > { %p806_p3 = pneg %p805_p0 }
 0x166   : > { %1043 = dma.done.wait (%p806_p3), %s617_s9, 4096  }
 0x167   : > { %1045 = vsyncadd (%p806_p3), %s617_s9, 4294963200  ;;  %s20_s17 = sadd.s32 1, %s1068_s17   ;;  %s1420_s12 = smov %s1052_s13 }
 0x168   : > { %p17_p4 = scmp.ge.s32.totalorder %s20_s17, 4   ;;  %s1421_s13 = smov %s1056_s14 }
 0x169   : > { %s1422_s14 = smov %s1151_s24  ;;  %s1423_s15 = smov %s1064_s16 }
 0x16a   : > { %s1424_s16 = smov %s1426_s18  ;;  %19 = sbr.rel (!%p17_p4) target bundleno = 7 (0x7), region = 94 }
 0x16f   :  { %622 = vsyncpa [#allocation3], 1 }
 0x170   :  { %624 = vsyncpa [#allocation3 + $0x1], 1 }
 0x171   :  { %625 = vsyncpa [#allocation6], 1 }
 0x172   :  { %627 = vsyncpa [#allocation6 + $0x1], 1 }
 0x173   :  { %628 = vsyncpa [#allocation4], 1 }
 0x174   :  { %630 = vsyncpa [#allocation4 + $0x1], 1 }

</bundles_post_ra>
